<compile_context>
chip_gen: v7x
topology: tpu7x:2x2x1
jax: 0.10.0
libtpu: 0.0.40
codegen_flags: <defaults>
</compile_context>

<pallas_src>
import functools

import jax
import jax.numpy as jnp
from jax.experimental import pallas as pl
from jax.experimental.pallas import tpu as pltpu

F1, F2 = 100, 200        # hidden sizes from the PyTorch module
F1P, F2P = 128, 256      # vreg-aligned padded sizes


def mlp_kernel(x_ref, w1_ref, b1_ref, w2_ref, b2_ref, w3_ref, b3_ref, o_ref):
    # x_ref: (1, TB) f32 -- one batch tile, batch on the lane axis.
    x = x_ref[...]

    # Layer 1: Linear(1, 100) + ReLU.  K == 1 => outer product; keep it on the
    # VPU as a broadcast multiply instead of a degenerate MXU matmul.
    h1 = jnp.maximum(w1_ref[...] * x + b1_ref[...], 0.0)            # (F1P, TB) f32

    # Layer 2: Linear(100, 200) + ReLU.  The only real matmul -> MXU, bf16
    # operands (w2 pre-cast in the wrapper), f32 accumulation.
    h2 = jnp.dot(w2_ref[...], h1.astype(jnp.bfloat16),
                 preferred_element_type=jnp.float32) + b2_ref[...]  # (F2P, TB) f32
    h2 = jnp.maximum(h2, 0.0)

    # Layer 3: Linear(200, 1).  M == 1 => VPU multiply + sublane reduce (XLU);
    # avoids a near-empty MXU pass.  Result is a lane-dense (1, TB) row.
    out = jnp.sum(h2 * w3_ref[...], axis=0, keepdims=True) + b3_ref[...]
    o_ref[...] = out.astype(o_ref.dtype)                            # lane-dense store


@functools.partial(jax.jit, static_argnames=("tb",))
def mlp_forward(x, params, *, tb=1024):
    """x: (N, 1) float32.  params: PyTorch-layout weights/biases.  Returns (N, 1)."""
    N = x.shape[0]
    n_pad = pl.cdiv(N, tb) * tb
    grid = (n_pad // tb,)

    # [features, batch]: transpose x and zero-pad batch to a tile multiple.
    xt = jnp.pad(x.T, ((0, 0), (0, n_pad - N)))                      # (1, n_pad)

    # Zero-pad params to vreg-aligned feature sizes (exact: padded activations
    # are 0 and contribute nothing) and pre-cast the layer-2 weight to bf16.
    w1p = jnp.pad(params["w1"], ((0, F1P - F1), (0, 0)))                              # (128, 1)
    b1p = jnp.pad(params["b1"].reshape(F1, 1), ((0, F1P - F1), (0, 0)))               # (128, 1)
    w2p = jnp.pad(params["w2"], ((0, F2P - F2), (0, F1P - F1))).astype(jnp.bfloat16)  # (256, 128)
    b2p = jnp.pad(params["b2"].reshape(F2, 1), ((0, F2P - F2), (0, 0)))               # (256, 1)
    w3p = jnp.pad(params["w3"].T, ((0, F2P - F2), (0, 0)))                            # (256, 1)
    b3p = params["b3"].reshape(1, 1)                                                  # (1, 1)

    def full(shape):
        return pl.BlockSpec(shape, lambda i: (0,) * len(shape))

    out_t = pl.pallas_call(
        mlp_kernel,
        out_shape=jax.ShapeDtypeStruct((1, n_pad), x.dtype),
        grid=grid,
        in_specs=[
            pl.BlockSpec((1, tb), lambda i: (0, i)),    # x tile, lane-dense
            full((F1P, 1)), full((F1P, 1)),             # w1, b1
            full((F2P, F1P)), full((F2P, 1)),           # w2 (bf16), b2
            full((F2P, 1)), full((1, 1)),               # w3, b3
        ],
        out_specs=pl.BlockSpec((1, tb), lambda i: (0, i)),   # lane-dense output row
        compiler_params=pltpu.CompilerParams(
            # Independent batch tiles -> shard grid across TensorCores (v7x).
            dimension_semantics=("parallel",),
        ),
    )(xt, w1p, b1p, w2p, b2p, w3p, b3p)

    return out_t[:, :N].T                                            # (N, 1)


def init_params(key):
    """PyTorch nn.Linear-style init: W (out,in), b (out,), U(-1/sqrt(in), 1/sqrt(in))."""
    ks = jax.random.split(key, 6)

    def linear(kw, kb, fan_in, fan_out):
        bound = 1.0 / float(fan_in) ** 0.5
        w = jax.random.uniform(kw, (fan_out, fan_in), jnp.float32, -bound, bound)
        b = jax.random.uniform(kb, (fan_out,), jnp.float32, -bound, bound)
        return w, b

    w1, b1 = linear(ks[0], ks[1], 1, F1)
    w2, b2 = linear(ks[2], ks[3], F1, F2)
    w3, b3 = linear(ks[4], ks[5], F2, 1)
    return dict(w1=w1, b1=b1, w2=w2, b2=b2, w3=w3, b3=b3)


def mlp_reference_f32(x, p):
    """Pure-f32 JAX equivalent of the PyTorch module."""
    h1 = jnp.maximum(x @ p["w1"].T + p["b1"], 0.0)
    h2 = jnp.maximum(h1 @ p["w2"].T + p["b2"], 0.0)
    return h2 @ p["w3"].T + p["b3"]


def mlp_reference_matched(x, p):
    """Reference matching the kernel's numerics (layer-2 matmul in bf16, f32 acc)."""
    h1 = jnp.maximum(x * p["w1"].T + p["b1"], 0.0)                   # in_features == 1
    h2 = jnp.dot(h1.astype(jnp.bfloat16), p["w2"].T.astype(jnp.bfloat16),
                 preferred_element_type=jnp.float32) + p["b2"]
    h2 = jnp.maximum(h2, 0.0)
    return jnp.sum(h2 * p["w3"], axis=-1, keepdims=True) + p["b3"]


if __name__ == "__main__":
    key = jax.random.PRNGKey(0)
    pkey, xkey = jax.random.split(key)
    params = init_params(pkey)

    # Small but non-trivial batch; 300 is NOT a multiple of the 128-wide tile,
    # so it exercises the cdiv grid + zero-pad + slice path (grid of 3 steps).
    N = 300
    x = jax.random.normal(xkey, (N, 1), jnp.float32)

    out = jax.block_until_ready(mlp_forward(x, params, tb=128))
    assert out.shape == (N, 1)

    ref_match = mlp_reference_matched(x, params)   # same numerics as the kernel
    ref_f32 = mlp_reference_f32(x, params)         # semantics of the PyTorch module
    assert jnp.allclose(out, ref_match, atol=5e-3, rtol=5e-3), "mismatch vs bf16-matched reference"
    assert jnp.allclose(out, ref_f32, atol=5e-2, rtol=5e-2), "mismatch vs f32 reference"

    print("KERNEL_OK")
</pallas_src>

<mosaic_0001>
module attributes {stable_mosaic.version = 11 : i64} {
  func.func @mlp_kernel(%arg0: i32, %arg1: memref<1x128xf32, #tpu.memory_space<vmem>>, %arg2: memref<128x1xf32, #tpu.memory_space<vmem>>, %arg3: memref<128x1xf32, #tpu.memory_space<vmem>>, %arg4: memref<256x128xbf16, #tpu.memory_space<vmem>>, %arg5: memref<256x1xf32, #tpu.memory_space<vmem>>, %arg6: memref<256x1xf32, #tpu.memory_space<vmem>>, %arg7: memref<1x1xf32, #tpu.memory_space<vmem>>, %arg8: memref<1x128xf32, #tpu.memory_space<vmem>>) attributes {dimension_semantics = [#tpu.dimension_semantics<parallel>], iteration_bounds = array<i64: 3>, scalar_prefetch = 0 : i64, scratch_operands = 0 : i64, tpu.core_type = #tpu.core_type<tc>, window_params = [{transform_indices = @transform_0, window_bounds = array<i64: 1, 128>}, {pipeline_mode = #tpu.pipeline_mode<synchronous>, transform_indices = @transform_1, window_bounds = array<i64: 128, 1>}, {pipeline_mode = #tpu.pipeline_mode<synchronous>, transform_indices = @transform_2, window_bounds = array<i64: 128, 1>}, {pipeline_mode = #tpu.pipeline_mode<synchronous>, transform_indices = @transform_3, window_bounds = array<i64: 256, 128>}, {pipeline_mode = #tpu.pipeline_mode<synchronous>, transform_indices = @transform_4, window_bounds = array<i64: 256, 1>}, {pipeline_mode = #tpu.pipeline_mode<synchronous>, transform_indices = @transform_5, window_bounds = array<i64: 256, 1>}, {pipeline_mode = #tpu.pipeline_mode<synchronous>, transform_indices = @transform_6, window_bounds = array<i64: 1, 1>}, {transform_indices = @transform_7, window_bounds = array<i64: 1, 128>}]} {
    %c0 = arith.constant 0 : index
    %c0_0 = arith.constant 0 : index
    %0 = vector.load %arg1[%c0, %c0_0] : memref<1x128xf32, #tpu.memory_space<vmem>>, vector<1x128xf32>
    %c0_1 = arith.constant 0 : index
    %c0_2 = arith.constant 0 : index
    %1 = vector.load %arg2[%c0_1, %c0_2] : memref<128x1xf32, #tpu.memory_space<vmem>>, vector<128x1xf32>
    %2 = vector.broadcast %1 : vector<128x1xf32> to vector<128x128xf32>
    %3 = vector.broadcast %0 : vector<1x128xf32> to vector<128x128xf32>
    %4 = arith.mulf %2, %3 : vector<128x128xf32>
    %c0_3 = arith.constant 0 : index
    %c0_4 = arith.constant 0 : index
    %5 = vector.load %arg3[%c0_3, %c0_4] : memref<128x1xf32, #tpu.memory_space<vmem>>, vector<128x1xf32>
    %6 = vector.broadcast %5 : vector<128x1xf32> to vector<128x128xf32>
    %7 = arith.addf %4, %6 : vector<128x128xf32>
    %cst = arith.constant 0.000000e+00 : f32
    %8 = vector.broadcast %cst : f32 to vector<128x128xf32>
    %9 = arith.maximumf %7, %8 : vector<128x128xf32>
    %c0_5 = arith.constant 0 : index
    %c0_6 = arith.constant 0 : index
    %10 = vector.load %arg4[%c0_5, %c0_6] : memref<256x128xbf16, #tpu.memory_space<vmem>>, vector<256x128xbf16>
    %11 = arith.truncf %9 : vector<128x128xf32> to vector<128x128xbf16>
    %cst_7 = arith.constant dense<0.000000e+00> : vector<256x128xf32>
    %12 = tpu.matmul %10, %11, %cst_7 {dimension_numbers = #tpu.dot_dimension_numbers<[1], [0], [0], [1], [0, 0, 1, 1], [], []>} : vector<256x128xbf16>, vector<128x128xbf16>, vector<256x128xf32> -> vector<256x128xf32>
    %c0_8 = arith.constant 0 : index
    %c0_9 = arith.constant 0 : index
    %13 = vector.load %arg5[%c0_8, %c0_9] : memref<256x1xf32, #tpu.memory_space<vmem>>, vector<256x1xf32>
    %14 = vector.broadcast %13 : vector<256x1xf32> to vector<256x128xf32>
    %15 = arith.addf %12, %14 : vector<256x128xf32>
    %cst_10 = arith.constant 0.000000e+00 : f32
    %16 = vector.broadcast %cst_10 : f32 to vector<256x128xf32>
    %17 = arith.maximumf %15, %16 : vector<256x128xf32>
    %c0_11 = arith.constant 0 : index
    %c0_12 = arith.constant 0 : index
    %18 = vector.load %arg6[%c0_11, %c0_12] : memref<256x1xf32, #tpu.memory_space<vmem>>, vector<256x1xf32>
    %19 = vector.broadcast %18 : vector<256x1xf32> to vector<256x128xf32>
    %20 = arith.mulf %17, %19 : vector<256x128xf32>
    %cst_13 = arith.constant dense<0.000000e+00> : vector<128xf32>
    %21 = vector.multi_reduction <add>, %20, %cst_13 [0] : vector<256x128xf32> to vector<128xf32>
    %22 = vector.shape_cast %21 : vector<128xf32> to vector<1x128xf32>
    %c0_14 = arith.constant 0 : index
    %c0_15 = arith.constant 0 : index
    %23 = vector.load %arg7[%c0_14, %c0_15] : memref<1x1xf32, #tpu.memory_space<vmem>>, vector<1x1xf32>
    %24 = vector.broadcast %23 : vector<1x1xf32> to vector<1x128xf32>
    %25 = arith.addf %22, %24 : vector<1x128xf32>
    %c0_16 = arith.constant 0 : index
    %c0_17 = arith.constant 0 : index
    %26 = vector.load %arg8[%c0_16, %c0_17] : memref<1x128xf32, #tpu.memory_space<vmem>>, vector<1x128xf32>
    tpu.vector_store %arg8[%c0_16, %c0_17], %25 {strides = array<i32>} : memref<1x128xf32, #tpu.memory_space<vmem>>, vector<1x128xf32>,
    return
  }
  func.func @transform_0(%arg0: i32) -> (i32, i32) {
    %c0_i32 = arith.constant 0 : i32
    %c0_i32_0 = arith.constant 0 : i32
    return %c0_i32, %arg0 : i32, i32
  }
  func.func @transform_1(%arg0: i32) -> (i32, i32) {
    %c0_i32 = arith.constant 0 : i32
    %c0_i32_0 = arith.constant 0 : i32
    %c0_i32_1 = arith.constant 0 : i32
    return %c0_i32, %c0_i32_0 : i32, i32
  }
  func.func @transform_2(%arg0: i32) -> (i32, i32) {
    %c0_i32 = arith.constant 0 : i32
    %c0_i32_0 = arith.constant 0 : i32
    %c0_i32_1 = arith.constant 0 : i32
    return %c0_i32, %c0_i32_0 : i32, i32
  }
  func.func @transform_3(%arg0: i32) -> (i32, i32) {
    %c0_i32 = arith.constant 0 : i32
    %c0_i32_0 = arith.constant 0 : i32
    %c0_i32_1 = arith.constant 0 : i32
    return %c0_i32, %c0_i32_0 : i32, i32
  }
  func.func @transform_4(%arg0: i32) -> (i32, i32) {
    %c0_i32 = arith.constant 0 : i32
    %c0_i32_0 = arith.constant 0 : i32
    %c0_i32_1 = arith.constant 0 : i32
    return %c0_i32, %c0_i32_0 : i32, i32
  }
  func.func @transform_5(%arg0: i32) -> (i32, i32) {
    %c0_i32 = arith.constant 0 : i32
    %c0_i32_0 = arith.constant 0 : i32
    %c0_i32_1 = arith.constant 0 : i32
    return %c0_i32, %c0_i32_0 : i32, i32
  }
  func.func @transform_6(%arg0: i32) -> (i32, i32) {
    %c0_i32 = arith.constant 0 : i32
    %c0_i32_0 = arith.constant 0 : i32
    %c0_i32_1 = arith.constant 0 : i32
    return %c0_i32, %c0_i32_0 : i32, i32
  }
  func.func @transform_7(%arg0: i32) -> (i32, i32) {
    %c0_i32 = arith.constant 0 : i32
    %c0_i32_0 = arith.constant 0 : i32
    return %c0_i32, %arg0 : i32, i32
  }
}

</mosaic_0001>

<bundles_post_ra>
// kernel: mlp_forward.1
= control target key start
LH: loop header
LB: loop body
LE: loop exit
PB: predicated region body
PF: predicated region fallthrough
CT: control target
= control target key end

     0   :  { %s1548_s26 = smov 0   ;;  %s2086_s0 = inlined_call_operand.vmem [shape: f32[1,384], index: 0, kind: input, shape index: {}]   ;;  %s2087_s1 = inlined_call_operand.vmem [shape: f32[128,1], index: 1, kind: input, shape index: {}]   ;;  %s2088_s2 = inlined_call_operand.vmem [shape: f32[128,1], index: 2, kind: input, shape index: {}]   ;;  %s2089_s3 = inlined_call_operand.vmem [shape: bf16[256,128], index: 3, kind: input, shape index: {}]   ;;  %s2090_s4 = inlined_call_operand.vmem [shape: f32[256,1], index: 4, kind: input, shape index: {}]   ;;  %s2091_s5 = inlined_call_operand.vmem [shape: f32[256,1], index: 5, kind: input, shape index: {}]   ;;  %s2092_s6 = inlined_call_operand.<no memory space> [shape: f32[1,1], index: 6, kind: input, shape index: {}]   ;;  %s2093_s7 = inlined_call_operand.vmem [shape: f32[1,384], index: 7, kind: output, shape index: {}]  }
   0x1   :  { %v12_v0 = vstv %s2092_s6 }
   0x2   :  { %13 = vst [vmem:[#allocation2] sm:$0x1] %v12_v0 }
   0x3 LB: > { %s1357_s27 = sadd.s32 4294967295, %s1502_s26   ;;  %p1361_p0 = scmp.ge.s32.totalorder %s1502_s26, 1  ;;  %s1502_s26 = sphi %s1548_s26, %s19_s26  }
   0x4   : > { %p237_p1 = scmp.lt.s32.totalorder %s1502_s26, 4 }
   0x6   : > { %p238_p2 = pnand %p1361_p0, %p237_p1 }
   0x8   : > { %241 = sbr.rel (%p238_p2) target bundleno = 513 (0x201), region = 48 }
   0xf   : > { %v391_v1 = vld [vmem:[%s2088_s2] sm:$0xff]  ;;  %v1504_v3 = vmov 0   ;;  %v392_v4 = vld [vmem:[%s2088_s2 + $0x8] sm:$0xff]  ;;  %v276_v6 = vld [vmem:[%s2087_s1 + $0x18] sm:$0xff]  ;;  %p265_p3 = scmp.lt.s32.totalorder %s1357_s27, 2 }
  0x10   : > { %v273_v2 = vld [vmem:[%s2087_s1] sm:$0xff]  ;;  %1479 = vset.pattern.permute.xlu1 %v1504_v3  ;;  %1478 = vset.pattern.permute.xlu0 %v1504_v3  ;;  %v274_v5 = vld [vmem:[%s2087_s1 + $0x8] sm:$0xff]  ;;  %v275_v7 = vld [vmem:[%s2087_s1 + $0x10] sm:$0xff] }
  0x11   : > { %409 = vperm.xlu1 %1479, %v391_v1   ;;  %291 = vperm.xlu0 %1478, %v273_v2   ;;  %v394_v8 = vld [vmem:[%s2088_s2 + $0x18] sm:$0xff]  ;;  %v393_v9 = vld [vmem:[%s2088_s2 + $0x10] sm:$0xff]  ;;  %v278_v10 = vld [vmem:[%s2087_s1 + $0x28] sm:$0xff]  ;;  %s2099_s27 = smov (!%p265_p3, %s1357_s27), 2 }
  0x12   : > { %v277_v11 = vld [vmem:[%s2087_s1 + $0x20] sm:$0xff]  ;;  %v396_v12 = vld [vmem:[%s2088_s2 + $0x28] sm:$0xff]  ;;  %v280_v14 = vld [vmem:[%s2087_s1 + $0x38] sm:$0xff]  ;;  %s267_s6 = scalar_lea.vmem %s2086_s0, %s2099_s27  ;;  %s270_s13 = scalar_lea.vmem %s2093_s7, %s2099_s27 }
  0x13   : > { %v395_v13 = vld [vmem:[%s2088_s2 + $0x20] sm:$0xff]  ;;  %v279_v15 = vld [vmem:[%s2087_s1 + $0x30] sm:$0xff]  ;;  %v398_v16 = vld [vmem:[%s2088_s2 + $0x38] sm:$0xff] }
  0x14   : > { %v397_v17 = vld [vmem:[%s2088_s2 + $0x30] sm:$0xff]  ;;  %v282_v18 = vld [vmem:[%s2087_s1 + $0x48] sm:$0xff]  ;;  %v281_v19 = vld [vmem:[%s2087_s1 + $0x40] sm:$0xff] }
  0x15   : > { %414 = vperm.xlu1 %1479, %v392_v4   ;;  %296 = vperm.xlu0 %1478, %v274_v5   ;;  %v400_v20 = vld [vmem:[%s2088_s2 + $0x48] sm:$0xff]  ;;  %v399_v21 = vld [vmem:[%s2088_s2 + $0x40] sm:$0xff]  ;;  %v284_v22 = vld [vmem:[%s2087_s1 + $0x58] sm:$0xff] }
  0x16   : > { %v283_v23 = vld [vmem:[%s2087_s1 + $0x50] sm:$0xff]  ;;  %v402_v24 = vld [vmem:[%s2088_s2 + $0x58] sm:$0xff]  ;;  %v286_v26 = vld [vmem:[%s2087_s1 + $0x68] sm:$0xff] }
  0x17   : > { %v401_v25 = vld [vmem:[%s2088_s2 + $0x50] sm:$0xff]  ;;  %v285_v27 = vld [vmem:[%s2087_s1 + $0x60] sm:$0xff]  ;;  %v404_v28 = vld [vmem:[%s2088_s2 + $0x68] sm:$0xff] }
  0x18   : > { %v403_v29 = vld [vmem:[%s2088_s2 + $0x60] sm:$0xff]  ;;  %v288_v30 = vld [vmem:[%s2087_s1 + $0x78] sm:$0xff]  ;;  %v287_v31 = vld [vmem:[%s2087_s1 + $0x70] sm:$0xff] }
  0x19   : > { %306 = vperm.xlu1 %1479, %v276_v6   ;;  %301 = vperm.xlu0 %1478, %v275_v7   ;;  %v406_v32 = vld [vmem:[%s2088_s2 + $0x78] sm:$0xff]  ;;  %v405_v33 = vld [vmem:[%s2088_s2 + $0x70] sm:$0xff]  ;;  %v560_v34 = vld [vmem:[%s2090_s4 + $0x8] sm:$0xff] }
  0x1a   : > { %v559_v35 = vld [vmem:[%s2090_s4] sm:$0xff]  ;;  %v562_v36 = vld [vmem:[%s2090_s4 + $0x18] sm:$0xff]  ;;  %v561_v37 = vld [vmem:[%s2090_s4 + $0x10] sm:$0xff] }
  0x1b   : > { %v1480_v38 = vld [vmem:[%s2089_s3] sm:$0xff]   ;;  %v564_v40 = vld [vmem:[%s2090_s4 + $0x28] sm:$0xff]  ;;  %v566_v42 = vld [vmem:[%s2090_s4 + $0x38] sm:$0xff] }
  0x1c   : > { %v1481_v39 = vld [vmem:[%s2089_s3 + $0x40] sm:$0xff]   ;;  %1421 = vmatprep.mubr.bf16.mxu0 %v1480_v38  ;;  %v565_v43 = vld [vmem:[%s2090_s4 + $0x30] sm:$0xff]  ;;  %v568_v44 = vld [vmem:[%s2090_s4 + $0x48] sm:$0xff] }
  0x1d   : > { %424 = vperm.xlu1 %1479, %v394_v8   ;;  %419 = vperm.xlu0 %1478, %v393_v9   ;;  %v563_v41 = vld [vmem:[%s2090_s4 + $0x20] sm:$0xff]  ;;  %v570_v46 = vld [vmem:[%s2090_s4 + $0x58] sm:$0xff]  ;;  %v569_v47 = vld [vmem:[%s2090_s4 + $0x50] sm:$0xff] }
  0x1e   : > { %1437 = vmatprep.mubr.bf16.mxu1 %v1481_v39  ;;  %v567_v45 = vld [vmem:[%s2090_s4 + $0x40] sm:$0xff]  ;;  %v572_v48 = vld [vmem:[%s2090_s4 + $0x68] sm:$0xff]  ;;  %v574_v50 = vld [vmem:[%s2090_s4 + $0x78] sm:$0xff] }
  0x1f   : > { %v571_v49 = vld [vmem:[%s2090_s4 + $0x60] sm:$0xff]  ;;  %v573_v51 = vld [vmem:[%s2090_s4 + $0x70] sm:$0xff]  ;;  %v576_v52 = vld [vmem:[%s2090_s4 + $0x88] sm:$0xff] }
  0x20   : > { %v575_v53 = vld [vmem:[%s2090_s4 + $0x80] sm:$0xff]  ;;  %v578_v54 = vld [vmem:[%s2090_s4 + $0x98] sm:$0xff]  ;;  %v577_v55 = vld [vmem:[%s2090_s4 + $0x90] sm:$0xff] }
  0x21   : > { %316 = vperm.xlu1 %1479, %v278_v10   ;;  %311 = vperm.xlu0 %1478, %v277_v11   ;;  %v580_v56 = vld [vmem:[%s2090_s4 + $0xa8] sm:$0xff]  ;;  %v579_v57 = vld [vmem:[%s2090_s4 + $0xa0] sm:$0xff]  ;;  %v582_v58 = vld [vmem:[%s2090_s4 + $0xb8] sm:$0xff] }
  0x22   : > { %v581_v59 = vld [vmem:[%s2090_s4 + $0xb0] sm:$0xff]  ;;  %v584_v60 = vld [vmem:[%s2090_s4 + $0xc8] sm:$0xff]  ;;  %v583_v61 = vld [vmem:[%s2090_s4 + $0xc0] sm:$0xff] }
  0x23   : > { %v586_v62 = vld [vmem:[%s2090_s4 + $0xd8] sm:$0xff]  ;;  %v585_v63 = vld [vmem:[%s2090_s4 + $0xd0] sm:$0xff]  ;;  %v588_v0 = vld [vmem:[%s2090_s4 + $0xe8] sm:$0xff] }
  0x24   : > { %v587_v1 = vld [vmem:[%s2090_s4 + $0xe0] sm:$0xff]  ;;  %v1041_v2 = vld [vmem:[%s2091_s5 + $0x8] sm:$0xff]  ;;  %v1043_v5 = vld [vmem:[%s2091_s5 + $0x18] sm:$0xff] }
  0x25   : > { %434 = vperm.xlu1 %1479, %v396_v12   ;;  %429 = vperm.xlu0 %1478, %v395_v13   ;;  %v1040_v3 = vld [vmem:[%s2091_s5] sm:$0xff]  ;;  %v1042_v6 = vld [vmem:[%s2091_s5 + $0x10] sm:$0xff]  ;;  %v1045_v10 = vld [vmem:[%s2091_s5 + $0x28] sm:$0xff] }
  0x26   : > { %v1764_v4 = vld [vmem:[%s267_s6] ss:$0 sm:$0xff]  ;;  %v1053_v39 = vld [vmem:[%s2091_s5 + $0x68] sm:$0xff] }
  0x27   : > { %v1044_v11 = vld [vmem:[%s2091_s5 + $0x20] sm:$0xff] }
  0x29   : > { %326 = vperm.xlu1 %1479, %v280_v14   ;;  %321 = vperm.xlu0 %1478, %v279_v15  }
  0x2d   : > { %444 = vperm.xlu1 %1479, %v398_v16   ;;  %439 = vperm.xlu0 %1478, %v397_v17   ;;  %v1047_v16 = vld [vmem:[%s2091_s5 + $0x38] sm:$0xff]  ;;  %v1046_v17 = vld [vmem:[%s2091_s5 + $0x30] sm:$0xff] }
  0x31   : > { %336 = vperm.xlu1 %1479, %v282_v18   ;;  %331 = vperm.xlu0 %1478, %v281_v19  }
  0x35   : > { %454 = vperm.xlu1 %1479, %v400_v20   ;;  %449 = vperm.xlu0 %1478, %v399_v21  }
  0x39   : > { %346 = vperm.xlu1 %1479, %v284_v22   ;;  %341 = vperm.xlu0 %1478, %v283_v23   ;;  %v1049_v23 = vld [vmem:[%s2091_s5 + $0x48] sm:$0xff] }
  0x3d   : > { %464 = vperm.xlu1 %1479, %v402_v24   ;;  %459 = vperm.xlu0 %1478, %v401_v25   ;;  %v1048_v24 = vld [vmem:[%s2091_s5 + $0x40] sm:$0xff] }
  0x41   : > { %356 = vperm.xlu1 %1479, %v286_v26   ;;  %351 = vperm.xlu0 %1478, %v285_v27  }
  0x45   : > { %474 = vperm.xlu1 %1479, %v404_v28   ;;  %469 = vperm.xlu0 %1478, %v403_v29  }
  0x49   : > { %366 = vperm.xlu1 %1479, %v288_v30   ;;  %361 = vperm.xlu0 %1478, %v287_v31  }
  0x4d   : > { %484 = vperm.xlu1 %1479, %v406_v32   ;;  %479 = vperm.xlu0 %1478, %v405_v33   ;;  %v1051_v32 = vld [vmem:[%s2091_s5 + $0x58] sm:$0xff]  ;;  %v1050_v33 = vld [vmem:[%s2091_s5 + $0x50] sm:$0xff] }
  0x51   : > { %598 = vperm.xlu1 %1479, %v560_v34   ;;  %593 = vperm.xlu0 %1478, %v559_v35  }
  0x55   : > { %608 = vperm.xlu1 %1479, %v562_v36   ;;  %603 = vperm.xlu0 %1478, %v561_v37  }
  0x59   : > { %618 = vperm.xlu1 %1479, %v564_v40   ;;  %613 = vperm.xlu0 %1478, %v563_v41   ;;  %v1052_v40 = vld [vmem:[%s2091_s5 + $0x60] sm:$0xff] }
  0x5d   : > { %628 = vperm.xlu1 %1479, %v566_v42   ;;  %623 = vperm.xlu0 %1478, %v565_v43  }
  0x61   : > { %638 = vperm.xlu1 %1479, %v568_v44   ;;  %633 = vperm.xlu0 %1478, %v567_v45  }
  0x65   : > { %648 = vperm.xlu1 %1479, %v570_v46   ;;  %643 = vperm.xlu0 %1478, %v569_v47   ;;  %v1055_v47 = vld [vmem:[%s2091_s5 + $0x78] sm:$0xff] }
  0x69   : > { %658 = vperm.xlu1 %1479, %v572_v48   ;;  %653 = vperm.xlu0 %1478, %v571_v49   ;;  %v1054_v48 = vld [vmem:[%s2091_s5 + $0x70] sm:$0xff] }
  0x6d   : > { %668 = vperm.xlu1 %1479, %v574_v50   ;;  %663 = vperm.xlu0 %1478, %v573_v51  }
  0x71   : > { %678 = vperm.xlu1 %1479, %v576_v52   ;;  %673 = vperm.xlu0 %1478, %v575_v53  }
  0x75   : > { %688 = vperm.xlu1 %1479, %v578_v54   ;;  %683 = vperm.xlu0 %1478, %v577_v55   ;;  %v1057_v54 = vld [vmem:[%s2091_s5 + $0x88] sm:$0xff]  ;;  %v1056_v55 = vld [vmem:[%s2091_s5 + $0x80] sm:$0xff] }
  0x79   : > { %698 = vperm.xlu1 %1479, %v580_v56   ;;  %693 = vperm.xlu0 %1478, %v579_v57  }
  0x7d   : > { %708 = vperm.xlu1 %1479, %v582_v58   ;;  %703 = vperm.xlu0 %1478, %v581_v59  }
  0x81   : > { %718 = vperm.xlu1 %1479, %v584_v60   ;;  %713 = vperm.xlu0 %1478, %v583_v61  }
  0x85   : > { %728 = vperm.xlu1 %1479, %v586_v62   ;;  %723 = vperm.xlu0 %1478, %v585_v63   ;;  %v1059_v62 = vld [vmem:[%s2091_s5 + $0x98] sm:$0xff]  ;;  %v1058_v63 = vld [vmem:[%s2091_s5 + $0x90] sm:$0xff] }
  0x89   : > { %738 = vperm.xlu1 %1479, %v588_v0   ;;  %733 = vperm.xlu0 %1478, %v587_v1  }
  0x8d   : > { %1079 = vperm.xlu1 %1479, %v1041_v2   ;;  %1074 = vperm.xlu0 %1478, %v1040_v3  }
  0x90   : > { %v410_v7 = vpop.permute.xlu1 %409  ;;  %v292_v8 = vpop.permute.xlu0 %291 }
  0x91   : > { %v375_v9 = vmul.f32 %v1764_v4, %v292_v8  ;;  %1089 = vperm.xlu1 %1479, %v1043_v5   ;;  %1084 = vperm.xlu0 %1478, %v1042_v6   ;;  %v1061_v6 = vld [vmem:[%s2091_s5 + $0xa8] sm:$0xff] }
  0x93   : > { %v487_v14 = vadd.f32 %v410_v7, %v375_v9  ;;  %v1060_v7 = vld [vmem:[%s2091_s5 + $0xa0] sm:$0xff] }
  0x94   : > { %v415_v12 = vpop.permute.xlu1 %414  ;;  %v297_v13 = vpop.permute.xlu0 %296 }
  0x95   : > { %v376_v15 = vmul.f32 %v1764_v4, %v297_v13  ;;  %1099 = vperm.xlu1 %1479, %v1045_v10   ;;  %1094 = vperm.xlu0 %1478, %v1044_v11   ;;  %v503_v21 = vmax.f32 %v487_v14, 0.0  ;;  %v1063_v14 = vld [vmem:[%s2091_s5 + $0xb8] sm:$0xff] }
  0x97   : > { %v488_v18 = vadd.f32 %v415_v12, %v376_v15  ;;  %v1062_v15 = vld [vmem:[%s2091_s5 + $0xb0] sm:$0xff] }
  0x98   : > { %v307_v19 = vpop.permute.xlu1 %306  ;;  %v302_v20 = vpop.permute.xlu0 %301 }
  0x99   : > { %v504_v22 = vmax.f32 %v488_v18, 0.0  ;;  %1109 = vperm.xlu1 %1479, %v1047_v16   ;;  %1104 = vperm.xlu0 %1478, %v1046_v17   ;;  %v378_v26 = vmul.f32 %v1764_v4, %v307_v19  ;;  %v377_v27 = vmul.f32 %v1764_v4, %v302_v20 }
  0x9b   : > { %v551_v25 = vpack.c.bf16 %v504_v22, %v503_v21  ;;  %v1065_v21 = vld [vmem:[%s2091_s5 + $0xc8] sm:$0xff]  ;;  %v1064_v22 = vld [vmem:[%s2091_s5 + $0xc0] sm:$0xff] }
  0x9c   : > { %v425_v28 = vpop.permute.xlu1 %424  ;;  %v420_v29 = vpop.permute.xlu0 %419 }
  0x9d   : > { %v490_v30 = vadd.f32 %v425_v28, %v378_v26  ;;  %v489_v31 = vadd.f32 %v420_v29, %v377_v27  ;;  %1119 = vperm.xlu1 %1479, %v1049_v23   ;;  %1114 = vperm.xlu0 %1478, %v1048_v24   ;;  %v1067_v29 = vld [vmem:[%s2091_s5 + $0xd8] sm:$0xff] }
  0x9e   : > { %1405 = vmatprep.subr.bf16.mxu0 %v551_v25  ;;  %1453 = vmatprep.subr.bf16.mxu1 %v551_v25 }
  0x9f   : > { %v506_v34 = vmax.f32 %v490_v30, 0.0  ;;  %v505_v35 = vmax.f32 %v489_v31, 0.0  ;;  %1406 = vmatpush3.bf16.msra.mxu0 %v551_v25  ;;  %1461 = vmatpush3.bf16.msra.mxu1 %v551_v25  ;;  %v1066_v30 = vld [vmem:[%s2091_s5 + $0xd0] sm:$0xff] }
  0xa0   : > { %v317_v36 = vpop.permute.xlu1 %316  ;;  %v312_v37 = vpop.permute.xlu0 %311 }
  0xa1   : > { %v552_v38 = vpack.c.bf16 %v506_v34, %v505_v35  ;;  %1129 = vperm.xlu1 %1479, %v1051_v32   ;;  %1124 = vperm.xlu0 %1478, %v1050_v33   ;;  %v380_v41 = vmul.f32 %v1764_v4, %v317_v36  ;;  %v379_v42 = vmul.f32 %v1764_v4, %v312_v37  ;;  %v1068_v36 = vld [vmem:[%s2091_s5 + $0xe0] sm:$0xff]  ;;  %v589_v37 = vld [vmem:[%s2090_s4 + $0xf0] sm:$0xff] }
  0xa3   : > { %1407 = vmatprep.subr.bf16.mxu0 %v552_v38  ;;  %1454 = vmatprep.subr.bf16.mxu1 %v552_v38 }
  0xa4   : > { %v435_v43 = vpop.permute.xlu1 %434  ;;  %v430_v44 = vpop.permute.xlu0 %429  ;;  %1408 = vmatpush3.bf16.msra.mxu0 %v552_v38  ;;  %1462 = vmatpush3.bf16.msra.mxu1 %v552_v38 }
  0xa5   : > { %v492_v45 = vadd.f32 %v435_v43, %v380_v41  ;;  %v491_v46 = vadd.f32 %v430_v44, %v379_v42  ;;  %1139 = vperm.xlu1 %1479, %v1053_v39   ;;  %1134 = vperm.xlu0 %1478, %v1052_v40   ;;  %v1069_v44 = vld [vmem:[%s2091_s5 + $0xe8] sm:$0xff] }
  0xa7   : > { %v508_v49 = vmax.f32 %v492_v45, 0.0  ;;  %v507_v50 = vmax.f32 %v491_v46, 0.0  ;;  %v590_v45 = vld [vmem:[%s2090_s4 + $0xf8] sm:$0xff] }
  0xa8   : > { %v327_v51 = vpop.permute.xlu1 %326  ;;  %v322_v52 = vpop.permute.xlu0 %321 }
  0xa9   : > { %v553_v53 = vpack.c.bf16 %v508_v49, %v507_v50  ;;  %1149 = vperm.xlu1 %1479, %v1055_v47   ;;  %1144 = vperm.xlu0 %1478, %v1054_v48   ;;  %v382_v56 = vmul.f32 %v1764_v4, %v327_v51  ;;  %v381_v57 = vmul.f32 %v1764_v4, %v322_v52  ;;  %v1071_v51 = vld [vmem:[%s2091_s5 + $0xf8] sm:$0xff]  ;;  %v1070_v52 = vld [vmem:[%s2091_s5 + $0xf0] sm:$0xff] }
  0xab   : > { %1409 = vmatprep.subr.bf16.mxu0 %v553_v53  ;;  %1455 = vmatprep.subr.bf16.mxu1 %v553_v53 }
  0xac   : > { %v445_v58 = vpop.permute.xlu1 %444  ;;  %v440_v59 = vpop.permute.xlu0 %439  ;;  %1410 = vmatpush3.bf16.msra.mxu0 %v553_v53  ;;  %1463 = vmatpush3.bf16.msra.mxu1 %v553_v53 }
  0xad   : > { %v494_v60 = vadd.f32 %v445_v58, %v382_v56  ;;  %v493_v61 = vadd.f32 %v440_v59, %v381_v57  ;;  %1159 = vperm.xlu1 %1479, %v1057_v54   ;;  %1154 = vperm.xlu0 %1478, %v1056_v55   ;;  %v1301_v59 = vld [vmem:[#allocation2] sm:$0x1] }
  0xaf   : > { %v510_v0 = vmax.f32 %v494_v60, 0.0  ;;  %v509_v1 = vmax.f32 %v493_v61, 0.0 }
  0xb0   : > { %v337_v2 = vpop.permute.xlu1 %336  ;;  %v332_v3 = vpop.permute.xlu0 %331 }
  0xb1   : > { %v554_v5 = vpack.c.bf16 %v510_v0, %v509_v1  ;;  %1169 = vperm.xlu1 %1479, %v1059_v62   ;;  %1164 = vperm.xlu0 %1478, %v1058_v63   ;;  %v384_v8 = vmul.f32 %v1764_v4, %v337_v2  ;;  %v383_v9 = vmul.f32 %v1764_v4, %v332_v3  ;;  %v1483_v63 = vld [vmem:[%s2089_s3 + $0x48] sm:$0xff]   ;;  %v1484_v0 = vld [vmem:[%s2089_s3 + $0x10] sm:$0xff]   ;;  %v1486_v2 = vld [vmem:[%s2089_s3 + $0x18] sm:$0xff]  }
  0xb2   : > { %v1485_v1 = vld [vmem:[%s2089_s3 + $0x50] sm:$0xff]   ;;  %v1487_v3 = vld [vmem:[%s2089_s3 + $0x58] sm:$0xff]  }
  0xb3   : > { %1411 = vmatprep.subr.bf16.mxu0 %v554_v5  ;;  %1456 = vmatprep.subr.bf16.mxu1 %v554_v5 }
  0xb4   : > { %v455_v10 = vpop.permute.xlu1 %454  ;;  %v450_v11 = vpop.permute.xlu0 %449  ;;  %1412 = vmatpush3.bf16.msra.mxu0 %v554_v5  ;;  %1464 = vmatpush3.bf16.msra.mxu1 %v554_v5  ;;  %v1488_v5 = vld [vmem:[%s2089_s3 + $0x20] sm:$0xff]  }
  0xb5   : > { %v496_v12 = vadd.f32 %v455_v10, %v384_v8  ;;  %v495_v13 = vadd.f32 %v450_v11, %v383_v9  ;;  %1179 = vperm.xlu1 %1479, %v1061_v6   ;;  %1174 = vperm.xlu0 %1478, %v1060_v7   ;;  %v1489_v6 = vld [vmem:[%s2089_s3 + $0x60] sm:$0xff]   ;;  %v1490_v7 = vld [vmem:[%s2089_s3 + $0x28] sm:$0xff]   ;;  %v1492_v9 = vld [vmem:[%s2089_s3 + $0x30] sm:$0xff]  }
  0xb6   : > { %v1491_v8 = vld [vmem:[%s2089_s3 + $0x68] sm:$0xff]   ;;  %v1493_v10 = vld [vmem:[%s2089_s3 + $0x70] sm:$0xff]   ;;  %v1494_v11 = vld [vmem:[%s2089_s3 + $0x38] sm:$0xff]  }
  0xb7   : > { %v512_v16 = vmax.f32 %v496_v12, 0.0  ;;  %v511_v17 = vmax.f32 %v495_v13, 0.0  ;;  %v1495_v12 = vld [vmem:[%s2089_s3 + $0x78] sm:$0xff]  }
  0xb8   : > { %v347_v18 = vpop.permute.xlu1 %346  ;;  %v342_v19 = vpop.permute.xlu0 %341 }
  0xb9   : > { %v555_v20 = vpack.c.bf16 %v512_v16, %v511_v17  ;;  %1189 = vperm.xlu1 %1479, %v1063_v14   ;;  %1184 = vperm.xlu0 %1478, %v1062_v15   ;;  %v386_v23 = vmul.f32 %v1764_v4, %v347_v18  ;;  %v385_v24 = vmul.f32 %v1764_v4, %v342_v19 }
  0xbb   : > { %1413 = vmatprep.subr.bf16.mxu0 %v555_v20  ;;  %1457 = vmatprep.subr.bf16.mxu1 %v555_v20 }
  0xbc   : > { %v465_v25 = vpop.permute.xlu1 %464  ;;  %v460_v26 = vpop.permute.xlu0 %459  ;;  %1414 = vmatpush3.bf16.msra.mxu0 %v555_v20  ;;  %1465 = vmatpush3.bf16.msra.mxu1 %v555_v20 }
  0xbd   : > { %v498_v27 = vadd.f32 %v465_v25, %v386_v23  ;;  %v497_v28 = vadd.f32 %v460_v26, %v385_v24  ;;  %1199 = vperm.xlu1 %1479, %v1065_v21   ;;  %1194 = vperm.xlu0 %1478, %v1064_v22  }
  0xbf   : > { %v514_v31 = vmax.f32 %v498_v27, 0.0  ;;  %v513_v32 = vmax.f32 %v497_v28, 0.0 }
  0xc0   : > { %v357_v33 = vpop.permute.xlu1 %356  ;;  %v352_v34 = vpop.permute.xlu0 %351 }
  0xc1   : > { %v556_v35 = vpack.c.bf16 %v514_v31, %v513_v32  ;;  %1209 = vperm.xlu1 %1479, %v1067_v29   ;;  %1204 = vperm.xlu0 %1478, %v1066_v30   ;;  %v388_v38 = vmul.f32 %v1764_v4, %v357_v33  ;;  %v387_v39 = vmul.f32 %v1764_v4, %v352_v34 }
  0xc3   : > { %1415 = vmatprep.subr.bf16.mxu0 %v556_v35  ;;  %1458 = vmatprep.subr.bf16.mxu1 %v556_v35 }
  0xc4   : > { %v475_v40 = vpop.permute.xlu1 %474  ;;  %v470_v41 = vpop.permute.xlu0 %469  ;;  %1416 = vmatpush3.bf16.msra.mxu0 %v556_v35  ;;  %1466 = vmatpush3.bf16.msra.mxu1 %v556_v35 }
  0xc5   : > { %v500_v42 = vadd.f32 %v475_v40, %v388_v38  ;;  %v499_v43 = vadd.f32 %v470_v41, %v387_v39  ;;  %1214 = vperm.xlu1 %1479, %v1068_v36   ;;  %743 = vperm.xlu0 %1478, %v589_v37  }
  0xc7   : > { %v516_v46 = vmax.f32 %v500_v42, 0.0  ;;  %v515_v47 = vmax.f32 %v499_v43, 0.0 }
  0xc8   : > { %v367_v48 = vpop.permute.xlu1 %366  ;;  %v362_v49 = vpop.permute.xlu0 %361 }
  0xc9   : > { %v557_v50 = vpack.c.bf16 %v516_v46, %v515_v47  ;;  %1219 = vperm.xlu1 %1479, %v1069_v44   ;;  %748 = vperm.xlu0 %1478, %v590_v45   ;;  %v390_v53 = vmul.f32 %v1764_v4, %v367_v48  ;;  %v389_v54 = vmul.f32 %v1764_v4, %v362_v49  ;;  %v1482_v4 = vld [vmem:[%s2089_s3 + $0x8] sm:$0xff]  }
  0xcb   : > { %1417 = vmatprep.subr.bf16.mxu0 %v557_v50  ;;  %1459 = vmatprep.subr.bf16.mxu1 %v557_v50 }
  0xcc   : > { %v485_v55 = vpop.permute.xlu1 %484  ;;  %v480_v56 = vpop.permute.xlu0 %479  ;;  %1418 = vmatpush3.bf16.msra.mxu0 %v557_v50  ;;  %1467 = vmatpush3.bf16.msra.mxu1 %v557_v50 }
  0xcd   : > { %v502_v57 = vadd.f32 %v485_v55, %v390_v53  ;;  %v501_v58 = vadd.f32 %v480_v56, %v389_v54  ;;  %1229 = vperm.xlu1 %1479, %v1071_v51   ;;  %1224 = vperm.xlu0 %1478, %v1070_v52  }
  0xcf   : > { %v518_v60 = vmax.f32 %v502_v57, 0.0  ;;  %v517_v61 = vmax.f32 %v501_v58, 0.0 }
  0xd0   : > { %v599_v13 = vpop.permute.xlu1 %598  ;;  %v594_v14 = vpop.permute.xlu0 %593 }
  0xd1   : > { %v558_v62 = vpack.c.bf16 %v518_v60, %v517_v61  ;;  %1304 = vperm.xlu0 %1478, %v1301_v59  }
  0xd3   : > { %1419 = vmatprep.subr.bf16.mxu0 %v558_v62  ;;  %1460 = vmatprep.subr.bf16.mxu1 %v558_v62 }
  0xd4   : > { %1420 = vmatpush3.bf16.msra.mxu0 %v558_v62  ;;  %1468 = vmatpush3.bf16.msra.mxu1 %v558_v62  ;;  %v609_v15 = vpop.permute.xlu1 %608  ;;  %v604_v16 = vpop.permute.xlu0 %603 }
  0xd7   : > { %1422 = vmatmul.mubr.bf16.vlgmr.msra.gmra.mrb[0].mxu0 %v1482_v4  ;;  %1438 = vmatmul.mubr.bf16.vlgmr.msra.gmra.mrb[0].mxu1 %v1483_v63 }
  0xd8   : > { %1425 = vmatprep.mubr.bf16.mxu0 %v1484_v0  ;;  %1441 = vmatprep.mubr.bf16.mxu1 %v1485_v1  ;;  %v1920_v17 = vpop.permute.xlu1 %618  ;;  %v1922_v18 = vpop.permute.xlu0 %613 }
  0xdc   : > { %v1924_v19 = vpop.permute.xlu1 %628  ;;  %v1926_v20 = vpop.permute.xlu0 %623 }
  0xdf   : > { %1426 = vmatmul.mubr.bf16.gmra.mrb[4].mxu0 %v1486_v2  ;;  %1442 = vmatmul.mubr.bf16.gmra.mrb[4].mxu1 %v1487_v3 }
  0xe0   : > { %1429 = vmatprep.mubr.bf16.mxu0 %v1488_v5  ;;  %1445 = vmatprep.mubr.bf16.mxu1 %v1489_v6  ;;  %v1928_v21 = vpop.permute.xlu1 %638  ;;  %v1930_v22 = vpop.permute.xlu0 %633 }
  0xe4   : > { %v1932_v23 = vpop.permute.xlu1 %648  ;;  %v1934_v24 = vpop.permute.xlu0 %643 }
  0xe7   : > { %1430 = vmatmul.mubr.bf16.gmra.mrb[8].mxu0 %v1490_v7  ;;  %1446 = vmatmul.mubr.bf16.gmra.mrb[8].mxu1 %v1491_v8 }
  0xe8   : > { %1433 = vmatprep.mubr.bf16.mxu0 %v1492_v9  ;;  %1449 = vmatprep.mubr.bf16.mxu1 %v1493_v10  ;;  %v1936_v25 = vpop.permute.xlu1 %658  ;;  %v1938_v26 = vpop.permute.xlu0 %653 }
  0xec   : > { %v1940_v27 = vpop.permute.xlu1 %668  ;;  %v1942_v28 = vpop.permute.xlu0 %663 }
  0xef   : > { %1434 = vmatmul.mubr.bf16.gmra.mrb[12].mxu0 %v1494_v11  ;;  %1450 = vmatmul.mubr.bf16.gmra.mrb[12].mxu1 %v1495_v12 }
  0xf0   : > { %v1944_v29 = vpop.permute.xlu1 %678  ;;  %v1946_v30 = vpop.permute.xlu0 %673 }
  0xf4   : > { %v1948_v31 = vpop.permute.xlu1 %688  ;;  %v1950_v32 = vpop.permute.xlu0 %683 }
  0xf8   : > { %v1952_v33 = vpop.permute.xlu1 %698  ;;  %v1954_v34 = vpop.permute.xlu0 %693 }
  0xfc   : > { %v1956_v35 = vpop.permute.xlu1 %708  ;;  %v1958_v36 = vpop.permute.xlu0 %703 }
 0x100   : > { %v1960_v37 = vpop.permute.xlu1 %718  ;;  %v1962_v38 = vpop.permute.xlu0 %713 }
 0x104   : > { %v1964_v39 = vpop.permute.xlu1 %728  ;;  %v1966_v40 = vpop.permute.xlu0 %723 }
 0x108   : > { %v1968_v41 = vpop.permute.xlu1 %738  ;;  %v1970_v42 = vpop.permute.xlu0 %733 }
 0x109   : > { %2094 = vst [vmem:[#allocation3_spill] sm:$0xff] %v1968_v41  ;;  %2095 = vst [vmem:[#allocation4_spill] sm:$0xff] %v1970_v42 }
 0x10c   : > { %v1080_v43 = vpop.permute.xlu1 %1079  ;;  %v1075_v44 = vpop.permute.xlu0 %1074 }
 0x110   : > { %v1090_v45 = vpop.permute.xlu1 %1089  ;;  %v1085_v46 = vpop.permute.xlu0 %1084 }
 0x114   : > { %v1100_v47 = vpop.permute.xlu1 %1099  ;;  %v1095_v48 = vpop.permute.xlu0 %1094 }
 0x118   : > { %v1972_v49 = vpop.permute.xlu1 %1109  ;;  %v1105_v50 = vpop.permute.xlu0 %1104 }
 0x11c   : > { %v1974_v51 = vpop.permute.xlu1 %1119  ;;  %v1976_v52 = vpop.permute.xlu0 %1114 }
 0x120   : > { %v1978_v53 = vpop.permute.xlu1 %1129  ;;  %v1980_v54 = vpop.permute.xlu0 %1124 }
 0x124   : > { %v1982_v55 = vpop.permute.xlu1 %1139  ;;  %v1984_v56 = vpop.permute.xlu0 %1134 }
 0x128   : > { %v1994_v8 = vpop.permute.xlu1 %1149  ;;  %v1996_v9 = vpop.permute.xlu0 %1144 }
 0x1aa   : > { %v1423_v57 = vpop.f32.mrb[0].mxu0  ;;  %v1986_v58 = vpop.f32.mrb[0].mxu1 }
 0x1ab   : > { %v881_v59 = vpop.f32.mrb[1].mxu0  ;;  %v1988_v60 = vpop.f32.mrb[1].mxu1  ;;  %v890_v61 = vadd.f32 %v1423_v57, %v604_v16 }
 0x1ac   : > { %v882_v62 = vadd.f32 %v881_v59, %v594_v14  ;;  %v1424_v4 = vpop.f32.mrb[2].mxu0  ;;  %v1990_v63 = vpop.f32.mrb[2].mxu1 }
 0x1ad   : > { %v893_v0 = vadd.f32 %v1424_v4, %v609_v15  ;;  %v884_v1 = vpop.f32.mrb[3].mxu0  ;;  %v1992_v2 = vpop.f32.mrb[3].mxu1  ;;  %v1010_v6 = vmax.f32 %v890_v61, 0.0 }
 0x1ae   : > { %v1008_v3 = vmax.f32 %v882_v62, 0.0  ;;  %v885_v5 = vadd.f32 %v884_v1, %v599_v13 }
 0x1af   : > { %v1011_v10 = vmax.f32 %v893_v0, 0.0  ;;  %v1234_v15 = vmul.f32 %v1085_v46, %v1010_v6 }
 0x1b0   : > { %v1009_v7 = vmax.f32 %v885_v5, 0.0  ;;  %v1232_v11 = vmul.f32 %v1075_v44, %v1008_v3 }
 0x1b1   : > { %v1235_v5 = vmul.f32 %v1090_v45, %v1011_v10 }
 0x1b2   : > { %v1233_v12 = vmul.f32 %v1080_v43, %v1009_v7  ;;  %v1427_v16 = vpop.f32.mrb[4].mxu0  ;;  %v1998_v14 = vpop.f32.mrb[4].mxu1 }
 0x1b3   : > { %v897_v57 = vpop.f32.mrb[5].mxu0  ;;  %v2000_v59 = vpop.f32.mrb[5].mxu1  ;;  %v906_v62 = vadd.f32 %v1427_v16, %v1926_v20 }
 0x1b4   : > { %v1264_v4 = vadd.f32 %v1233_v12, %v1232_v11  ;;  %v898_v13 = vadd.f32 %v897_v57, %v1922_v18  ;;  %v1428_v61 = vpop.f32.mrb[6].mxu0  ;;  %v2004_v1 = vpop.f32.mrb[6].mxu1 }
 0x1b5   : > { %v900_v41 = vpop.f32.mrb[7].mxu0  ;;  %v2006_v0 = vpop.f32.mrb[7].mxu1  ;;  %v909_v3 = vadd.f32 %v1428_v61, %v1924_v19  ;;  %v1014_v42 = vmax.f32 %v906_v62, 0.0 }
 0x1b6   : > { %v1265_v43 = vadd.f32 %v1264_v4, %v1234_v15  ;;  %v1012_v44 = vmax.f32 %v898_v13, 0.0  ;;  %v901_v7 = vadd.f32 %v900_v41, %v1920_v17  ;;  %v2010_v20 = vpop.permute.xlu1 %1159  ;;  %v2012_v18 = vpop.permute.xlu0 %1154 }
 0x1b7   : > { %v1015_v16 = vmax.f32 %v909_v3, 0.0  ;;  %v1238_v19 = vmul.f32 %v1105_v50, %v1014_v42 }
 0x1b8   : > { %v1236_v46 = vmul.f32 %v1095_v48, %v1012_v44  ;;  %v1266_v6 = vadd.f32 %v1265_v43, %v1235_v5  ;;  %v1013_v11 = vmax.f32 %v901_v7, 0.0 }
 0x1ba   : > { %v1267_v12 = vadd.f32 %v1266_v6, %v1236_v46  ;;  %v1237_v45 = vmul.f32 %v1100_v47, %v1013_v11  ;;  %v1431_v10 = vpop.f32.mrb[8].mxu0  ;;  %v2014_v57 = vpop.f32.mrb[8].mxu1  ;;  %v1239_v47 = vmul.f32 %v1972_v49, %v1015_v16 }
 0x1bb   : > { %v913_v15 = vpop.f32.mrb[9].mxu0  ;;  %v2016_v4 = vpop.f32.mrb[9].mxu1  ;;  %v922_v62 = vadd.f32 %v1431_v10, %v1934_v24 }
 0x1bc   : > { %v1268_v13 = vadd.f32 %v1267_v12, %v1237_v45  ;;  %v914_v17 = vadd.f32 %v913_v15, %v1930_v22  ;;  %v1432_v41 = vpop.f32.mrb[10].mxu0  ;;  %v2019_v48 = vpop.f32.mrb[10].mxu1 }
 0x1bd   : > { %v916_v61 = vpop.f32.mrb[11].mxu0  ;;  %v2022_v5 = vpop.f32.mrb[11].mxu1  ;;  %v925_v3 = vadd.f32 %v1432_v41, %v1932_v23  ;;  %v1018_v6 = vmax.f32 %v922_v62, 0.0 }
 0x1be   : > { %v1269_v43 = vadd.f32 %v1268_v13, %v1238_v19  ;;  %v1016_v44 = vmax.f32 %v914_v17, 0.0  ;;  %v917_v7 = vadd.f32 %v916_v61, %v1928_v21  ;;  %v1170_v22 = vpop.permute.xlu1 %1169  ;;  %v1165_v46 = vpop.permute.xlu0 %1164 }
 0x1bf   : > { %v1019_v10 = vmax.f32 %v925_v3, 0.0 }
 0x1c0   : > { %v1240_v42 = vmul.f32 %v1976_v52, %v1016_v44  ;;  %v1270_v50 = vadd.f32 %v1269_v43, %v1239_v47  ;;  %v1017_v11 = vmax.f32 %v917_v7, 0.0  ;;  %v1242_v52 = vmul.f32 %v1980_v54, %v1018_v6 }
 0x1c1   : > { %v1243_v47 = vmul.f32 %v1978_v53, %v1019_v10  ;;  %v946_v54 = vadd.f32 %v1988_v60, %v1946_v30  ;;  %v949_v6 = vadd.f32 %v1992_v2, %v1944_v29  ;;  %v957_v30 = vadd.f32 %v1990_v63, %v1948_v31 }
 0x1c2   : > { %v1271_v12 = vadd.f32 %v1270_v50, %v1240_v42  ;;  %v1435_v24 = vpop.f32.mrb[12].mxu0  ;;  %v2028_v45 = vpop.f32.mrb[12].mxu1  ;;  %v1241_v49 = vmul.f32 %v1974_v51, %v1017_v11 }
 0x1c3   : > { %v929_v16 = vpop.f32.mrb[13].mxu0  ;;  %v2031_v15 = vpop.f32.mrb[13].mxu1  ;;  %v938_v17 = vadd.f32 %v1435_v24, %v1942_v28  ;;  %v1025_v60 = vmax.f32 %v949_v6, 0.0 }
 0x1c4   : > { %v930_v23 = vadd.f32 %v929_v16, %v1938_v26  ;;  %v1436_v21 = vpop.f32.mrb[14].mxu0  ;;  %v2034_v19 = vpop.f32.mrb[14].mxu1  ;;  %v1272_v13 = vadd.f32 %v1271_v12, %v1241_v49 }
 0x1c5   : > { %v932_v41 = vpop.f32.mrb[15].mxu0  ;;  %v2038_v62 = vpop.f32.mrb[15].mxu1  ;;  %v941_v43 = vadd.f32 %v1436_v21, %v1940_v27  ;;  %v1022_v7 = vmax.f32 %v938_v17, 0.0  ;;  %v1024_v27 = vmax.f32 %v946_v54, 0.0  ;;  %v965_v21 = vadd.f32 %v2006_v0, %v1952_v33 }
 0x1c6   : > { %v1020_v61 = vmax.f32 %v930_v23, 0.0  ;;  %v1273_v51 = vadd.f32 %v1272_v13, %v1242_v52  ;;  %v933_v44 = vadd.f32 %v932_v41, %v1936_v25  ;;  %v1175_v26 = vpop.permute.xlu0 %1174  ;;  %v1180_v50 = vpop.permute.xlu1 %1179  ;;  %v954_v25 = vadd.f32 %v1986_v58, %v1950_v32 }
 0x1c7   : > { %v1023_v53 = vmax.f32 %v941_v43, 0.0  ;;  %v1248_v23 = vmul.f32 %v2012_v18, %v1024_v27  ;;  %v1027_v58 = vmax.f32 %v957_v30, 0.0  ;;  %v978_v33 = vadd.f32 %v2016_v4, %v1962_v38 }
 0x1c8   : > { %v1244_v3 = vmul.f32 %v1984_v56, %v1020_v61  ;;  %v1274_v42 = vadd.f32 %v1273_v51, %v1243_v47  ;;  %v1021_v28 = vmax.f32 %v933_v44, 0.0  ;;  %v1246_v56 = vmul.f32 %v1996_v9, %v1022_v7 }
 0x1c9   : > { %v1247_v49 = vmul.f32 %v1994_v8, %v1023_v53  ;;  %v1026_v2 = vmax.f32 %v954_v25, 0.0  ;;  %v1249_v9 = vmul.f32 %v2010_v20, %v1025_v60  ;;  %v970_v8 = vadd.f32 %v1998_v14, %v1958_v36 }
 0x1ca   : > { %v1275_v11 = vadd.f32 %v1274_v42, %v1244_v3  ;;  %v1245_v12 = vmul.f32 %v1982_v55, %v1021_v28  ;;  %v1185_v10 = vpop.permute.xlu0 %1184  ;;  %v1190_v29 = vpop.permute.xlu1 %1189  ;;  %v962_v55 = vadd.f32 %v2000_v59, %v1954_v34  ;;  %v1251_v18 = vmul.f32 %v1170_v22, %v1027_v58 }
 0x1cb   : > { %v1250_v63 = vmul.f32 %v1165_v46, %v1026_v2  ;;  %v973_v34 = vadd.f32 %v2004_v1, %v1956_v35  ;;  %v1029_v59 = vmax.f32 %v965_v21, 0.0  ;;  %v1030_v47 = vmax.f32 %v970_v8, 0.0 }
 0x1cc   : > { %v1276_v24 = vadd.f32 %v1275_v11, %v1245_v12  ;;  %v1028_v13 = vmax.f32 %v962_v55, 0.0  ;;  %v981_v36 = vadd.f32 %v2022_v5, %v1960_v37  ;;  %v986_v35 = vadd.f32 %v2014_v57, %v1966_v40  ;;  %v2097_v12 = vld [vmem:[#allocation3_spill] sm:$0xff] }
 0x1cd   : > { %v1031_v46 = vmax.f32 %v973_v34, 0.0  ;;  %v1253_v43 = vmul.f32 %v1180_v50, %v1029_v59  ;;  %v1254_v22 = vmul.f32 %v1185_v10, %v1030_v47  ;;  %v1032_v1 = vmax.f32 %v978_v33, 0.0  ;;  %v2096_v50 = vld [vmem:[#allocation4_spill] sm:$0xff] }
 0x1ce   : > { %v1277_v16 = vadd.f32 %v1276_v24, %v1246_v56  ;;  %v1195_v31 = vpop.permute.xlu0 %1194  ;;  %v1200_v41 = vpop.permute.xlu1 %1199  ;;  %v1252_v20 = vmul.f32 %v1175_v26, %v1028_v13  ;;  %v989_v26 = vadd.f32 %v2019_v48, %v1964_v39  ;;  %v1033_v38 = vmax.f32 %v981_v36, 0.0 }
 0x1cf   : > { %v1255_v54 = vmul.f32 %v1190_v29, %v1031_v46  ;;  %v1034_v42 = vmax.f32 %v986_v35, 0.0  ;;  %v1256_v28 = vmul.f32 %v1195_v31, %v1032_v1  ;;  %v994_v37 = vadd.f32 %v2031_v15, %v2096_v50 }
 0x1d0   : > { %v1278_v32 = vadd.f32 %v1277_v16, %v1247_v49  ;;  %v1035_v11 = vmax.f32 %v989_v26, 0.0  ;;  %v1257_v53 = vmul.f32 %v1200_v41, %v1033_v38  ;;  %v997_v40 = vadd.f32 %v2038_v62, %v2097_v12 }
 0x1d1   : > { %v1036_v39 = vmax.f32 %v994_v37, 0.0 }
 0x1d2   : > { %v1279_v52 = vadd.f32 %v1278_v32, %v1248_v23  ;;  %v1205_v51 = vpop.permute.xlu0 %1204  ;;  %v1210_v44 = vpop.permute.xlu1 %1209  ;;  %v1037_v30 = vmax.f32 %v997_v40, 0.0 }
 0x1d3   : > { %v1258_v25 = vmul.f32 %v1205_v51, %v1034_v42  ;;  %v1259_v24 = vmul.f32 %v1210_v44, %v1035_v11 }
 0x1d4   : > { %v1280_v17 = vadd.f32 %v1279_v52, %v1249_v9  ;;  %v1307_v52 = vlaneseq }
 0x1d6   : > { %v1281_v61 = vadd.f32 %v1280_v17, %v1250_v63  ;;  %v744_v7 = vpop.permute.xlu0 %743  ;;  %v1215_v6 = vpop.permute.xlu1 %1214 }
 0x1d7   : > { %v1002_v27 = vadd.f32 %v2028_v45, %v744_v7  ;;  %v1260_v16 = vmul.f32 %v1215_v6, %v1036_v39 }
 0x1d8   : > { %v1282_v0 = vadd.f32 %v1281_v61, %v1251_v18 }
 0x1d9   : > { %v1038_v49 = vmax.f32 %v1002_v27, 0.0 }
 0x1da   : > { %v1283_v14 = vadd.f32 %v1282_v0, %v1252_v20  ;;  %v749_v56 = vpop.permute.xlu0 %748  ;;  %v1220_v15 = vpop.permute.xlu1 %1219 }
 0x1db   : > { %v1005_v10 = vadd.f32 %v2034_v19, %v749_v56  ;;  %v1261_v23 = vmul.f32 %v1220_v15, %v1037_v30  ;;  %v1308_v19 = vshrl.u32 %v1307_v52, 7 }
 0x1dc   : > { %v1284_v3 = vadd.f32 %v1283_v14, %v1253_v43 }
 0x1dd   : > { %v1039_v2 = vmax.f32 %v1005_v10, 0.0  ;;  %v1309_v17 = vsub.s32 0, %v1308_v19 }
 0x1de   : > { %v1285_v4 = vadd.f32 %v1284_v3, %v1254_v22  ;;  %v1225_v62 = vpop.permute.xlu0 %1224  ;;  %v1230_v45 = vpop.permute.xlu1 %1229 }
 0x1df   : > { %v1262_v32 = vmul.f32 %v1225_v62, %v1038_v49  ;;  %v1263_v9 = vmul.f32 %v1230_v45, %v1039_v2 }
 0x1e0   : > { %v1286_v5 = vadd.f32 %v1285_v4, %v1255_v54 }
 0x1e2   : > { %v1287_v57 = vadd.f32 %v1286_v5, %v1256_v28  ;;  %v1305_v18 = vpop.permute.xlu0 %1304 }
 0x1e3   : > { %v1310_v59 = vrot.slane %v1305_v18, %v1309_v17 }
 0x1e4   : > { %v1288_v48 = vadd.f32 %v1287_v57, %v1257_v53 }
 0x1e6   : > { %v1289_v60 = vadd.f32 %v1288_v48, %v1258_v25 }
 0x1e8   : > { %v1290_v29 = vadd.f32 %v1289_v60, %v1259_v24 }
 0x1ea   : > { %v1291_v55 = vadd.f32 %v1290_v29, %v1260_v16 }
 0x1ec   : > { %v1292_v58 = vadd.f32 %v1291_v55, %v1261_v23 }
 0x1ee   : > { %v1293_v21 = vadd.f32 %v1292_v58, %v1262_v32 }
 0x1f0   : > { %v1294_v31 = vadd.f32 %v1293_v21, %v1263_v9 }
 0x1f2   : > { %v1295_v63 = vrot.slane %v1294_v31, 4 }
 0x1f4   : > { %v1296_v8 = vadd.f32 %v1295_v63, %v1294_v31 }
 0x1f6   : > { %v1297_v13 = vrot.slane %v1296_v8, 2 }
 0x1f8   : > { %v1298_v41 = vadd.f32 %v1297_v13, %v1296_v8 }
 0x1fa   : > { %v1299_v34 = vrot.slane %v1298_v41, 1 }
 0x1fc   : > { %v1300_v61 = vadd.f32 %v1299_v34, %v1298_v41 }
 0x1fe   : > { %v1311_v47 = vadd.f32 %v1310_v59, %v1300_v61 }
 0x200   : > { %1312 = vst [vmem:[%s270_s13] sm:$0x1] %v1311_v47 }
 0x201 PF: > { %s19_s26 = sadd.s32 1, %s1502_s26  }
 0x202   : > { %p16_p4 = scmp.ge.s32.totalorder %s19_s26, 5  }
 0x204   :  { %18 = sbr.rel (!%p16_p4) target bundleno = 3 (0x3), region = 78 }

</bundles_post_ra>
